<compile_context>
chip_gen: v7x
topology: tpu7x:2x2x1
jax: 0.10.0
libtpu: 0.0.40
codegen_flags: <defaults>
</compile_context>

<pallas_src>
import functools

import jax
import jax.numpy as jnp
from jax.experimental import pallas as pl
from jax.experimental.pallas import tpu as pltpu


LANE = 128        # lane width: pad class dims to multiples of 128
TILE_B_MAX = 256  # max batch rows per grid step (feeds v6e/v7x 256-row MXU)


def _round_up(x, m):
    return ((x + m - 1) // m) * m


def ensemble_kernel(x_ref, w_ref, wfc_ref, o_ref):
    """out = relu(x @ [w1|w2|0]) @ [wfc.T|0]   (dropout = identity in eval).

    x_ref   : (TB, D)          f32  (cast to bf16 in-kernel)
    w_ref   : (D, C2_pad)      bf16 (w1 and w2 concatenated, zero-padded to 128)
    wfc_ref : (C2_pad, C_pad)  f32  (wfc.T zero-padded on both dims)
    o_ref   : (TB, C_pad)      bf16
    """
    # In-kernel bf16 cast: x travels HBM->VMEM once as f32, no wrapper round trip.
    xb = x_ref[...].astype(jnp.bfloat16)
    # Fused stage-1 matmul; f32 accumulation on the MXU.  Zero-padded weight
    # columns keep the accumulator lane-dense (no masked vreg layouts).
    l = jnp.dot(xb, w_ref[...], preferred_element_type=jnp.float32)
    # Dropout(0.1) is identity in eval mode; ReLU on the f32 accumulator (VPU).
    h = jnp.maximum(l, 0.0)
    # Fused fc matmul (bias=False), kept in f32 — tiny K, avoids an extra
    # bf16 rounding of h.  Zero-padded rows/cols contribute nothing.
    out = jnp.dot(h, wfc_ref[...], preferred_element_type=jnp.float32)
    o_ref[...] = out.astype(o_ref.dtype)


@functools.partial(jax.jit, static_argnames=("num_classes",))
def ensemble_forward(x_nchw, w_cat_pad, wfc_t_pad, *, num_classes):
    """x_nchw: (B,Cin,H,W) f32; w_cat_pad: (D,C2_pad) bf16; wfc_t_pad: (C2_pad,C_pad) f32."""
    B = x_nchw.shape[0]
    D = w_cat_pad.shape[0]
    c2_pad = w_cat_pad.shape[1]
    c_pad = wfc_t_pad.shape[1]

    # Contiguous NCHW -> (B, D) reshape is metadata-only; no cast, no pad here.
    x_flat = x_nchw.reshape(B, D)

    # Batch tiling: multiple of 16 (bf16 sublane pack), capped at TILE_B_MAX.
    tile_b = min(TILE_B_MAX, _round_up(B, 16))
    # Ensure >=2 grid steps when the batch can be split, so v7x's second
    # TensorCore gets work ("parallel" grid axis).  No cost on v5e/v6e.
    if B >= 32 and pl.cdiv(B, tile_b) < 2:
        tile_b = _round_up(pl.cdiv(B, 2), 16)
    grid_b = pl.cdiv(B, tile_b)

    out_pad = pl.pallas_call(
        ensemble_kernel,
        out_shape=jax.ShapeDtypeStruct((B, c_pad), jnp.bfloat16),
        grid_spec=pltpu.PrefetchScalarGridSpec(
            num_scalar_prefetch=0,
            grid=(grid_b,),
            in_specs=[
                # x batch tile (f32); ragged last block is masked by Pallas.
                pl.BlockSpec((tile_b, D), lambda i: (i, 0)),
                # Resident stage-1 weights (constant index_map -> DMA'd once).
                pl.BlockSpec((D, c2_pad), lambda i: (0, 0)),
                # Resident fc weight.
                pl.BlockSpec((c2_pad, c_pad), lambda i: (0, 0)),
            ],
            out_specs=pl.BlockSpec((tile_b, c_pad), lambda i: (i, 0)),
        ),
        compiler_params=pltpu.CompilerParams(
            dimension_semantics=("parallel",),
            vmem_limit_bytes=32 * 1024 * 1024,
        ),
    )(x_flat, w_cat_pad, wfc_t_pad)

    # Tiny epilogue: drop lane padding, restore f32 like the PyTorch module.
    return out_pad[:, :num_classes].astype(jnp.float32)


def make_params(key, in_features, num_classes):
    """Returns (f32 reference params, packed kernel params).  One-time host work."""
    k1, k2 = jax.random.split(key)
    # TODO(synk): model1/model2 in the original module are arbitrary external
    # networks (HF-style, returning .logits / tuples); represented here by
    # deterministic synthetic linear classifiers over the flattened image.
    w1 = jax.random.normal(k1, (in_features, num_classes), jnp.float32) * 0.02
    w2 = jax.random.normal(k2, (in_features, num_classes), jnp.float32) * 0.02
    # Exact fc init from Ensemble.__init__:
    #   identity = torch.eye(num_classes // 2, 2 * num_classes)
    #   fc.weight = cat((identity, identity), dim=0)  -> (num_classes, 2*num_classes)
    identity = jnp.eye(num_classes // 2, 2 * num_classes, dtype=jnp.float32)
    wfc = jnp.concatenate([identity, identity], axis=0)          # (C, 2C)

    c2 = 2 * num_classes
    c2_pad = _round_up(c2, LANE)
    c_pad = _round_up(num_classes, LANE)

    # Stage-1 weights: [w1 | w2], bf16, zero-padded to lane-dense c2_pad cols.
    w_cat_pad = jnp.zeros((in_features, c2_pad), jnp.bfloat16)
    w_cat_pad = w_cat_pad.at[:, :c2].set(
        jnp.concatenate([w1, w2], axis=1).astype(jnp.bfloat16))

    # fc weight transposed, f32, zero-padded on both dims (rows to c2_pad,
    # cols to c_pad) so the fc matmul and output slab are lane-dense.
    wfc_t_pad = jnp.zeros((c2_pad, c_pad), jnp.float32)
    wfc_t_pad = wfc_t_pad.at[:c2, :num_classes].set(wfc.T)

    return (w1, w2, wfc), (w_cat_pad, wfc_t_pad)


def reference_forward(x_nchw, w1, w2, wfc):
    """Pure-JAX f32 reference mirroring the PyTorch forward (eval mode)."""
    x_flat = x_nchw.reshape(x_nchw.shape[0], -1).astype(jnp.float32)
    l1 = x_flat @ w1          # model1(x).logits
    l2 = x_flat @ w2          # model2(x)[0]  (labels=None path)
    xcat = jnp.concatenate([l1, l2], axis=1)
    # dropout(0.1) is identity in eval mode
    h = jnp.maximum(xcat, 0.0)
    return h @ wfc.T


if __name__ == "__main__":
    # Small shapes consistent with an image-classifier ensemble.
    B, C_in, H, W = 2, 4, 16, 16
    NUM_CLASSES = 12
    D = C_in * H * W

    key = jax.random.PRNGKey(0)
    kx, kp = jax.random.split(key)
    x = jax.random.normal(kx, (B, C_in, H, W), jnp.float32)
    (w1, w2, wfc), (w_cat_pad, wfc_t_pad) = make_params(kp, D, NUM_CLASSES)

    out = ensemble_forward(x, w_cat_pad, wfc_t_pad, num_classes=NUM_CLASSES)
    out = jax.block_until_ready(out)

    ref = reference_forward(x, w1, w2, wfc)
    assert out.shape == (B, NUM_CLASSES), out.shape
    # bf16 MXU operands / bf16 output vs the f32 reference -> bf16 tolerance.
    assert jnp.allclose(out, ref, atol=3e-2, rtol=3e-2), (out, ref)

    print("KERNEL_OK")
</pallas_src>

<mosaic_0001>
module attributes {stable_mosaic.version = 11 : i64} {
  func.func @ensemble_kernel(%arg0: i32, %arg1: memref<16x1024xf32, #tpu.memory_space<vmem>>, %arg2: memref<1024x128xbf16, #tpu.memory_space<vmem>>, %arg3: memref<128x128xf32, #tpu.memory_space<vmem>>, %arg4: memref<16x128xbf16, #tpu.memory_space<vmem>>) attributes {dimension_semantics = [#tpu.dimension_semantics<parallel>], iteration_bounds = array<i64: 1>, scalar_prefetch = 0 : i64, scratch_operands = 0 : i64, tpu.core_type = #tpu.core_type<tc>, window_params = [{transform_indices = @transform_0, window_bounds = array<i64: 16, 1024>}, {pipeline_mode = #tpu.pipeline_mode<synchronous>, transform_indices = @transform_1, window_bounds = array<i64: 1024, 128>}, {pipeline_mode = #tpu.pipeline_mode<synchronous>, transform_indices = @transform_2, window_bounds = array<i64: 128, 128>}, {transform_indices = @transform_3, window_bounds = array<i64: 16, 128>}]} {
    %c0 = arith.constant 0 : index
    %c0_0 = arith.constant 0 : index
    %0 = vector.load %arg1[%c0, %c0_0] : memref<16x1024xf32, #tpu.memory_space<vmem>>, vector<16x1024xf32>
    %1 = arith.truncf %0 : vector<16x1024xf32> to vector<16x1024xbf16>
    %c0_1 = arith.constant 0 : index
    %c0_2 = arith.constant 0 : index
    %2 = vector.load %arg2[%c0_1, %c0_2] : memref<1024x128xbf16, #tpu.memory_space<vmem>>, vector<1024x128xbf16>
    %cst = arith.constant dense<0.000000e+00> : vector<16x128xf32>
    %3 = tpu.matmul %1, %2, %cst {dimension_numbers = #tpu.dot_dimension_numbers<[1], [0], [0], [1], [0, 0, 1, 1], [], []>} : vector<16x1024xbf16>, vector<1024x128xbf16>, vector<16x128xf32> -> vector<16x128xf32>
    %cst_3 = arith.constant 0.000000e+00 : f32
    %4 = vector.broadcast %cst_3 : f32 to vector<16x128xf32>
    %5 = arith.maximumf %3, %4 : vector<16x128xf32>
    %c0_4 = arith.constant 0 : index
    %c0_5 = arith.constant 0 : index
    %6 = vector.load %arg3[%c0_4, %c0_5] : memref<128x128xf32, #tpu.memory_space<vmem>>, vector<128x128xf32>
    %cst_6 = arith.constant dense<0.000000e+00> : vector<16x128xf32>
    %7 = tpu.matmul %5, %6, %cst_6 {dimension_numbers = #tpu.dot_dimension_numbers<[1], [0], [0], [1], [0, 0, 1, 1], [], []>} : vector<16x128xf32>, vector<128x128xf32>, vector<16x128xf32> -> vector<16x128xf32>
    %8 = arith.truncf %7 : vector<16x128xf32> to vector<16x128xbf16>
    %c0_7 = arith.constant 0 : index
    %c0_8 = arith.constant 0 : index
    %9 = vector.load %arg4[%c0_7, %c0_8] : memref<16x128xbf16, #tpu.memory_space<vmem>>, vector<16x128xbf16>
    tpu.vector_store %arg4[%c0_7, %c0_8], %8 {strides = array<i32>} : memref<16x128xbf16, #tpu.memory_space<vmem>>, vector<16x128xbf16>,
    return
  }
  func.func @transform_0(%arg0: i32) -> (i32, i32) {
    %c0_i32 = arith.constant 0 : i32
    %c0_i32_0 = arith.constant 0 : i32
    return %arg0, %c0_i32 : i32, i32
  }
  func.func @transform_1(%arg0: i32) -> (i32, i32) {
    %c0_i32 = arith.constant 0 : i32
    %c0_i32_0 = arith.constant 0 : i32
    %c0_i32_1 = arith.constant 0 : i32
    return %c0_i32, %c0_i32_0 : i32, i32
  }
  func.func @transform_2(%arg0: i32) -> (i32, i32) {
    %c0_i32 = arith.constant 0 : i32
    %c0_i32_0 = arith.constant 0 : i32
    %c0_i32_1 = arith.constant 0 : i32
    return %c0_i32, %c0_i32_0 : i32, i32
  }
  func.func @transform_3(%arg0: i32) -> (i32, i32) {
    %c0_i32 = arith.constant 0 : i32
    %c0_i32_0 = arith.constant 0 : i32
    return %arg0, %c0_i32 : i32, i32
  }
}

</mosaic_0001>

<bundles_post_ra>
// kernel: ensemble_forward.1
= control target key start
LH: loop header
LB: loop body
LE: loop exit
PB: predicated region body
PF: predicated region fallthrough
CT: control target
= control target key end

     0   :  { %8 = vsyncpa [#allocation3], 0  ;;  %s1464_s12 = smov [#allocation2]   ;;  %s1622_s0 = inlined_call_operand.vmem [shape: f32[2,1024], index: 0, kind: input, shape index: {}]   ;;  %s1623_s1 = inlined_call_operand.hbm [shape: bf16[1024,128], index: 1, kind: input, shape index: {}]   ;;  %s1624_s2 = inlined_call_operand.vmem [shape: f32[128,128], index: 2, kind: input, shape index: {}]   ;;  %s1625_s3 = inlined_call_operand.vmem [shape: bf16[2,128], index: 3, kind: output, shape index: {}]  }
   0x1   :  { %s16_s13 = sshll.u32 %s1464_s12, 4  ;;  %s1440_s16 = scalar_lea.hbm %s1623_s1, 8192  ;;  %s17_s13 = int_to_ptr.vmem [resolvable:$true] %s16_s13 }
   0x2   :  { %p1441_p0 = scmp.ne.s32.totalorder %s1623_s1, %s1440_s16  ;;  %p1444_p1 = scmp.lt.u32.totalorder %s1440_s16, %s1623_s1 }
   0x4   :  { %p1446_p2 = pnand %p1444_p1, %p1441_p0 }
   0x6   :  { %1449 = shalt.err (!%p1446_p2)
}
   0x7   :  { %s1450_s21 = scalar_lea.vmem %s17_s13, 8192  ;;  %p1455_p4 = scmp.lt.s32.totalorder %s17_s13, %s17_s13 }
   0x8   :  { %p1451_p3 = scmp.ne.s32.totalorder %s17_s13, %s1450_s21  ;;  %p1456_p5 = scmp.lt.s32.totalorder %s1450_s21, %s1450_s21 }
   0xa   :  { %p1457_p6 = por %p1456_p5, %p1455_p4 }
   0xc   :  { %p1458_p7 = pnand %p1457_p6, %p1451_p3 }
   0xe   :  { %1461 = shalt.err (!%p1458_p7)
}
   0xf   :  { %s1465_s22 = smov 64   ;;  %s1466_s23 = smov 4  }
  0x10   :  { %22 = dma.hbm_to_vmem [thread:$0]  %s1623_s1, 8192, %s17_s13, [#allocation3], %s1465_s22, %s1465_s22, %s1466_s23  }
  0x11   :  { %1462 = dma.done.wait [#allocation3], 8192  }
  0x12   :  { %1463 = vsyncadd [#allocation3], 4294959104  ;;  %v1352_v0 = vld [vmem:[#allocation2 + $0x40] sm:$0xff]   ;;  %v1356_v4 = vld [vmem:[#allocation2 + $0x48] sm:$0xff]   ;;  %v1467_v25 = vmov 1983009808   ;;  %v68_v27 = vlaneseq }
  0x13   :  { %v1353_v1 = vld [vmem:[#allocation2 + $0xc0] sm:$0xff]   ;;  %1174 = vmatprep.subr.bf16.mxu0 %v1352_v0  ;;  %v1357_v5 = vld [vmem:[#allocation2 + $0xc8] sm:$0xff]   ;;  %v1360_v8 = vld [vmem:[#allocation2 + $0x50] sm:$0xff]   ;;  %v66_v26 = vunpack.c.l.s4 %v1467_v25 }
  0x14   :  { %v1354_v2 = vld [vmem:[#allocation2] sm:$0xff]   ;;  %1196 = vmatprep.subr.bf16.mxu1 %v1353_v1  ;;  %v1358_v6 = vld [vmem:[#allocation2 + $0x8] sm:$0xff]   ;;  %v1361_v9 = vld [vmem:[#allocation2 + $0xd0] sm:$0xff]   ;;  %v1501_v33 = vshrl.u32 %v68_v27, 7 }
  0x15   :  { %v1355_v3 = vld [vmem:[#allocation2 + $0x80] sm:$0xff]   ;;  %1175 = vmatpush3.bf16.msra.mxu0 %v1354_v2  ;;  %v1359_v7 = vld [vmem:[#allocation2 + $0x88] sm:$0xff]   ;;  %v1362_v10 = vld [vmem:[#allocation2 + $0x10] sm:$0xff]   ;;  %v67_v32 = vunpack.c.0.s8 %v66_v26 }
  0x16   :  { %1197 = vmatpush3.bf16.msra.mxu1 %v1355_v3  ;;  %1176 = vmatprep.subr.bf16.mxu0 %v1356_v4  ;;  %v1363_v11 = vld [vmem:[#allocation2 + $0x90] sm:$0xff]   ;;  %v1364_v12 = vld [vmem:[#allocation2 + $0x58] sm:$0xff]   ;;  %v1368_v16 = vld [vmem:[#allocation2 + $0x60] sm:$0xff]  }
  0x17   :  { %1198 = vmatprep.subr.bf16.mxu1 %v1357_v5  ;;  %v1365_v13 = vld [vmem:[#allocation2 + $0xd8] sm:$0xff]   ;;  %v1369_v17 = vld [vmem:[#allocation2 + $0xe0] sm:$0xff]   ;;  %v1372_v20 = vld [vmem:[#allocation2 + $0x68] sm:$0xff]   ;;  %v1504_v37 = vsub.s32 %v67_v32, %v1501_v33 }
  0x18   :  { %v1366_v14 = vld [vmem:[#allocation2 + $0x18] sm:$0xff]   ;;  %v1370_v18 = vld [vmem:[#allocation2 + $0x20] sm:$0xff]   ;;  %v1373_v21 = vld [vmem:[#allocation2 + $0xe8] sm:$0xff]  }
  0x19   :  { %1177 = vmatpush3.bf16.msra.mxu0 %v1358_v6  ;;  %v1367_v15 = vld [vmem:[#allocation2 + $0x98] sm:$0xff]   ;;  %v1371_v19 = vld [vmem:[#allocation2 + $0xa0] sm:$0xff]   ;;  %v1374_v22 = vld [vmem:[#allocation2 + $0x28] sm:$0xff]  }
  0x1a   :  { %1199 = vmatpush3.bf16.msra.mxu1 %v1359_v7  ;;  %1178 = vmatprep.subr.bf16.mxu0 %v1360_v8  ;;  %v1375_v23 = vld [vmem:[#allocation2 + $0xa8] sm:$0xff]   ;;  %v1376_v24 = vld [vmem:[#allocation2 + $0x70] sm:$0xff]   ;;  %v1380_v31 = vld [vmem:[#allocation2 + $0x78] sm:$0xff]  }
  0x1b   :  { %1200 = vmatprep.subr.bf16.mxu1 %v1361_v9  ;;  %v1377_v28 = vld [vmem:[#allocation2 + $0xf0] sm:$0xff]   ;;  %v1381_v34 = vld [vmem:[#allocation2 + $0xf8] sm:$0xff]   ;;  %v1396_v53 = vld [vmem:[#allocation2 + $0x140] sm:$0xff]  }
  0x1c   :  { %v1378_v29 = vld [vmem:[#allocation2 + $0x30] sm:$0xff]   ;;  %v1382_v35 = vld [vmem:[#allocation2 + $0x38] sm:$0xff]   ;;  %v1397_v58 = vld [vmem:[#allocation2 + $0x1c0] sm:$0xff]  }
  0x1d   :  { %1179 = vmatpush3.bf16.msra.mxu0 %v1362_v10  ;;  %v1379_v30 = vld [vmem:[#allocation2 + $0xb0] sm:$0xff]   ;;  %v1383_v36 = vld [vmem:[#allocation2 + $0xb8] sm:$0xff]   ;;  %v1398_v62 = vld [vmem:[#allocation2 + $0x100] sm:$0xff]  }
  0x1e   :  { %1201 = vmatpush3.bf16.msra.mxu1 %v1363_v11  ;;  %1180 = vmatprep.subr.bf16.mxu0 %v1364_v12  ;;  %v1384_v38 = vld [vmem:[%s1622_s0] ss:$16 sps:$4 sm:$0xff]   ;;  %v1392_v43 = vld [vmem:[%s1622_s0 + $0x4] ss:$16 sps:$4 sm:$0xff]   ;;  %v1400_v4 = vld [vmem:[#allocation2 + $0x148] sm:$0xff]  }
  0x1f   :  { %1202 = vmatprep.subr.bf16.mxu1 %v1365_v13  ;;  %v1386_v39 = vld [vmem:[%s1622_s0 + $0x20] ss:$16 sps:$4 sm:$0xff]   ;;  %v71_v42 = vrot.slane %v1384_v38, %v1504_v37  ;;  %v1393_v44 = vld [vmem:[%s1622_s0 + $0x24] ss:$16 sps:$4 sm:$0xff]   ;;  %v78_v50 = vrot.slane %v1392_v43, %v1504_v37  ;;  %v1401_v7 = vld [vmem:[#allocation2 + $0x1c8] sm:$0xff]  }
  0x20   :  { %v1388_v40 = vld [vmem:[%s1622_s0 + $0x40] ss:$16 sps:$4 sm:$0xff]   ;;  %v1394_v45 = vld [vmem:[%s1622_s0 + $0x44] ss:$16 sps:$4 sm:$0xff]   ;;  %v85_v46 = vrot.slane %v1386_v39, %v1504_v37  ;;  %v92_v51 = vrot.slane %v1393_v44, %v1504_v37  ;;  %v1402_v8 = vld [vmem:[#allocation2 + $0x108] sm:$0xff]  }
  0x21   :  { %1181 = vmatpush3.bf16.msra.mxu0 %v1366_v14  ;;  %v1390_v41 = vld [vmem:[%s1622_s0 + $0x60] ss:$16 sps:$4 sm:$0xff]   ;;  %v143_v47 = vrot.slane %v1388_v40, %v1504_v37  ;;  %v1395_v49 = vld [vmem:[%s1622_s0 + $0x64] ss:$16 sps:$4 sm:$0xff]   ;;  %v150_v52 = vrot.slane %v1394_v45, %v1504_v37  ;;  %v1403_v9 = vld [vmem:[#allocation2 + $0x188] sm:$0xff]  }
  0x22   :  { %1203 = vmatpush3.bf16.msra.mxu1 %v1367_v15  ;;  %1182 = vmatprep.subr.bf16.mxu0 %v1368_v16  ;;  %v157_v48 = vrot.slane %v1390_v41, %v1504_v37  ;;  %v94_v54 = vcombine.high %v71_v42, %v85_v46  ;;  %v164_v56 = vrot.slane %v1395_v49, %v1504_v37  ;;  %v1399_v2 = vld [vmem:[#allocation2 + $0x180] sm:$0xff]   ;;  %v1404_v10 = vld [vmem:[#allocation2 + $0x150] sm:$0xff]   ;;  %v1408_v14 = vld [vmem:[#allocation2 + $0x158] sm:$0xff]  }
  0x23   :  { %1204 = vmatprep.subr.bf16.mxu1 %v1369_v17  ;;  %v93_v57 = vcombine.low %v71_v42, %v85_v46  ;;  %v96_v59 = vcombine.high %v78_v50, %v92_v51  ;;  %v95_v61 = vcombine.low %v78_v50, %v92_v51  ;;  %v1405_v11 = vld [vmem:[#allocation2 + $0x1d0] sm:$0xff]   ;;  %v1409_v15 = vld [vmem:[#allocation2 + $0x1d8] sm:$0xff]   ;;  %v1419_v25 = vld [vmem:[#allocation2 + $0x1a8] sm:$0xff]  }
  0x24   :  { %v166_v55 = vcombine.high %v143_v47, %v157_v48  ;;  %v165_v60 = vcombine.low %v143_v47, %v157_v48  ;;  %v168_v0 = vcombine.high %v150_v52, %v164_v56  ;;  %v167_v1 = vcombine.low %v150_v52, %v164_v56  ;;  %v1406_v12 = vld [vmem:[#allocation2 + $0x110] sm:$0xff]   ;;  %v1410_v16 = vld [vmem:[#allocation2 + $0x118] sm:$0xff]  }
  0x25   :  { %1183 = vmatpush3.bf16.msra.mxu0 %v1370_v18  ;;  %v1407_v13 = vld [vmem:[#allocation2 + $0x190] sm:$0xff]   ;;  %v1411_v17 = vld [vmem:[#allocation2 + $0x198] sm:$0xff]   ;;  %v1412_v18 = vld [vmem:[#allocation2 + $0x160] sm:$0xff]  }
  0x26   :  { %1205 = vmatpush3.bf16.msra.mxu1 %v1371_v19  ;;  %1184 = vmatprep.subr.bf16.mxu0 %v1372_v20  ;;  %v222_v63 = vpack.c.bf16 %v166_v55, %v94_v54  ;;  %v221_v3 = vpack.c.bf16 %v165_v60, %v93_v57  ;;  %v224_v5 = vpack.c.bf16 %v168_v0, %v96_v59  ;;  %v1413_v19 = vld [vmem:[#allocation2 + $0x1e0] sm:$0xff]   ;;  %v1420_v26 = vld [vmem:[#allocation2 + $0x170] sm:$0xff]   ;;  %v1426_v32 = vld [vmem:[#allocation2 + $0x138] sm:$0xff]  }
  0x27   :  { %1206 = vmatprep.subr.bf16.mxu1 %v1373_v21  ;;  %v223_v6 = vpack.c.bf16 %v167_v1, %v95_v61  ;;  %v1414_v20 = vld [vmem:[#allocation2 + $0x120] sm:$0xff]   ;;  %v1421_v27 = vld [vmem:[#allocation2 + $0x1f0] sm:$0xff]   ;;  %v1432_v38 = vld [vmem:[%s1622_s0 + $0x48] ss:$16 sps:$4 sm:$0xff]  }
  0x28   :  { %773 = vmatprep.mubr.bf16.mxu0 %v222_v63  ;;  %814 = vmatprep.mubr.bf16.mxu1 %v224_v5  ;;  %v1415_v21 = vld [vmem:[#allocation2 + $0x1a0] sm:$0xff]   ;;  %v1434_v39 = vld [vmem:[%s1622_s0 + $0x68] ss:$16 sps:$4 sm:$0xff]   ;;  %v1436_v40 = vld [vmem:[%s1622_s0 + $0xc] ss:$16 sps:$4 sm:$0xff]   ;;  %v179_v44 = vrot.slane %v1432_v38, %v1504_v37 }
  0x29   :  { %1185 = vmatpush3.bf16.msra.mxu0 %v1374_v22  ;;  %v1416_v22 = vld [vmem:[#allocation2 + $0x168] sm:$0xff]   ;;  %v193_v47 = vrot.slane %v1434_v39, %v1504_v37  ;;  %v114_v48 = vrot.slane %v1436_v40, %v1504_v37  ;;  %v907_v0 = vld [vmem:[%s1624_s2] sm:$0xff]  ;;  %v909_v1 = vld [vmem:[%s1624_s2 + $0x10] sm:$0xff] }
  0x2a   :  { %1207 = vmatpush3.bf16.msra.mxu1 %v1375_v23  ;;  %1186 = vmatprep.subr.bf16.mxu0 %v1376_v24  ;;  %v1417_v23 = vld [vmem:[#allocation2 + $0x1e8] sm:$0xff]   ;;  %v911_v5 = vld [vmem:[%s1624_s2 + $0x20] sm:$0xff] }
  0x2b   :  { %1208 = vmatprep.subr.bf16.mxu1 %v1377_v28  ;;  %v1418_v24 = vld [vmem:[#allocation2 + $0x128] sm:$0xff]   ;;  %v1422_v28 = vld [vmem:[#allocation2 + $0x130] sm:$0xff]   ;;  %v202_v54 = vcombine.high %v179_v44, %v193_v47  ;;  %v201_v56 = vcombine.low %v179_v44, %v193_v47 }
  0x2c   :  { %v1437_v41 = vld [vmem:[%s1622_s0 + $0x2c] ss:$16 sps:$4 sm:$0xff]  }
  0x2d   :  { %1187 = vmatpush3.bf16.msra.mxu0 %v1378_v29  ;;  %v1423_v29 = vld [vmem:[#allocation2 + $0x1b0] sm:$0xff]   ;;  %v1438_v45 = vld [vmem:[%s1622_s0 + $0x4c] ss:$16 sps:$4 sm:$0xff]   ;;  %v128_v49 = vrot.slane %v1437_v41, %v1504_v37 }
  0x2e   :  { %1209 = vmatpush3.bf16.msra.mxu1 %v1379_v30  ;;  %1188 = vmatprep.subr.bf16.mxu0 %v1380_v31  ;;  %v1424_v30 = vld [vmem:[#allocation2 + $0x178] sm:$0xff]   ;;  %v186_v51 = vrot.slane %v1438_v45, %v1504_v37 }
  0x2f   :  { %1210 = vmatprep.subr.bf16.mxu1 %v1381_v34  ;;  %v1425_v31 = vld [vmem:[#allocation2 + $0x1f8] sm:$0xff]   ;;  %v132_v55 = vcombine.high %v114_v48, %v128_v49  ;;  %v131_v57 = vcombine.low %v114_v48, %v128_v49 }
  0x30   :  { %v1427_v34 = vld [vmem:[#allocation2 + $0x1b8] sm:$0xff]  }
  0x31   :  { %1189 = vmatpush3.bf16.msra.mxu0 %v1382_v35  ;;  %v1428_v35 = vld [vmem:[%s1622_s0 + $0x8] ss:$16 sps:$4 sm:$0xff]   ;;  %v1439_v46 = vld [vmem:[%s1622_s0 + $0x6c] ss:$16 sps:$4 sm:$0xff]  }
  0x32   :  { %1211 = vmatpush3.bf16.msra.mxu1 %v1383_v36  ;;  %1218 = vmatprep.subr.bf16.mxu0 %v1396_v53  ;;  %v1430_v36 = vld [vmem:[%s1622_s0 + $0x28] ss:$16 sps:$4 sm:$0xff]   ;;  %v107_v42 = vrot.slane %v1428_v35, %v1504_v37  ;;  %v200_v52 = vrot.slane %v1439_v46, %v1504_v37 }
  0x33   :  { %1240 = vmatprep.subr.bf16.mxu1 %v1397_v58  ;;  %v121_v43 = vrot.slane %v1430_v36, %v1504_v37  ;;  %v908_v37 = vld [vmem:[%s1624_s2 + $0x8] sm:$0xff] }
  0x34   :  { %774 = vmatmul.mubr.bf16.vlgmr.msra.gmra.mrb[0].mxu0 %v221_v3  ;;  %v204_v58 = vcombine.high %v186_v51, %v200_v52  ;;  %v203_v59 = vcombine.low %v186_v51, %v200_v52  ;;  %v910_v3 = vld [vmem:[%s1624_s2 + $0x18] sm:$0xff] }
  0x35   :  { %1219 = vmatpush3.bf16.msra.mxu0 %v1398_v62  ;;  %815 = vmatmul.mubr.bf16.vlgmr.msra.gmra.mrb[0].mxu1 %v223_v6  ;;  %v130_v50 = vcombine.high %v107_v42, %v121_v43  ;;  %v129_v53 = vcombine.low %v107_v42, %v121_v43  ;;  %v912_v6 = vld [vmem:[%s1624_s2 + $0x28] sm:$0xff] }
  0x36   :  { %1220 = vmatprep.subr.bf16.mxu0 %v1400_v4  ;;  %1241 = vmatpush3.bf16.msra.mxu1 %v1399_v2  ;;  %v228_v62 = vpack.c.bf16 %v204_v58, %v132_v55  ;;  %v227_v63 = vpack.c.bf16 %v203_v59, %v131_v57  ;;  %v1315_v2 = vpack.c.bf16 %v908_v37, %v907_v0  ;;  %v1468_v57 = vmov 1966171168  }
  0x37   :  { %1242 = vmatprep.subr.bf16.mxu1 %v1401_v7  ;;  %v226_v60 = vpack.c.bf16 %v202_v54, %v130_v50  ;;  %v225_v61 = vpack.c.bf16 %v201_v56, %v129_v53  ;;  %v1319_v4 = vpack.c.bf16 %v910_v3, %v909_v1  ;;  %v1323_v7 = vpack.c.bf16 %v912_v6, %v911_v5 }
  0x38   :  { %896 = vmatprep.mubr.bf16.mxu1 %v228_v62  ;;  %v1002_v58 = vunpack.c.l.s4 %v1468_v57 }
  0x39   :  { %1221 = vmatpush3.bf16.msra.mxu0 %v1402_v8  ;;  %855 = vmatprep.mubr.bf16.mxu0 %v226_v60  ;;  %v913_v8 = vld [vmem:[%s1624_s2 + $0x30] sm:$0xff] }
  0x3a   :  { %1222 = vmatprep.subr.bf16.mxu0 %v1404_v10  ;;  %1243 = vmatpush3.bf16.msra.mxu1 %v1403_v9  ;;  %v914_v9 = vld [vmem:[%s1624_s2 + $0x38] sm:$0xff]  ;;  %v1003_v59 = vunpack.c.0.s8 %v1002_v58 }
  0x3b   :  { %1244 = vmatprep.subr.bf16.mxu1 %v1405_v11  ;;  %v1327_v10 = vpack.c.bf16 %v914_v9, %v913_v8  ;;  %v915_v11 = vld [vmem:[%s1624_s2 + $0x40] sm:$0xff] }
  0x3c   :  { %v1006_v60 = vsub.s32 %v1003_v59, %v1501_v33 }
  0x3d   :  { %1223 = vmatpush3.bf16.msra.mxu0 %v1406_v12  ;;  %v916_v12 = vld [vmem:[%s1624_s2 + $0x48] sm:$0xff] }
  0x3e   :  { %1224 = vmatprep.subr.bf16.mxu0 %v1408_v14  ;;  %1245 = vmatpush3.bf16.msra.mxu1 %v1407_v13  ;;  %v1331_v13 = vpack.c.bf16 %v916_v12, %v915_v11  ;;  %v917_v14 = vld [vmem:[%s1624_s2 + $0x50] sm:$0xff] }
  0x3f   :  { %1246 = vmatprep.subr.bf16.mxu1 %v1409_v15  ;;  %v918_v15 = vld [vmem:[%s1624_s2 + $0x58] sm:$0xff] }
  0x41   :  { %1225 = vmatpush3.bf16.msra.mxu0 %v1410_v16  ;;  %v1335_v16 = vpack.c.bf16 %v918_v15, %v917_v14 }
  0x42   :  { %1226 = vmatprep.subr.bf16.mxu0 %v1412_v18  ;;  %1247 = vmatpush3.bf16.msra.mxu1 %v1411_v17  ;;  %v919_v17 = vld [vmem:[%s1624_s2 + $0x60] sm:$0xff]  ;;  %v920_v18 = vld [vmem:[%s1624_s2 + $0x68] sm:$0xff] }
  0x43   :  { %1248 = vmatprep.subr.bf16.mxu1 %v1413_v19  ;;  %v1339_v19 = vpack.c.bf16 %v920_v18, %v919_v17 }
  0x45   :  { %1227 = vmatpush3.bf16.msra.mxu0 %v1414_v20  ;;  %v921_v20 = vld [vmem:[%s1624_s2 + $0x70] sm:$0xff] }
  0x46   :  { %1228 = vmatprep.subr.bf16.mxu0 %v1416_v22  ;;  %1249 = vmatpush3.bf16.msra.mxu1 %v1415_v21  ;;  %v922_v21 = vld [vmem:[%s1624_s2 + $0x78] sm:$0xff] }
  0x47   :  { %1250 = vmatprep.subr.bf16.mxu1 %v1417_v23  ;;  %v1343_v22 = vpack.c.bf16 %v922_v21, %v921_v20 }
  0x49   :  { %1229 = vmatpush3.bf16.msra.mxu0 %v1418_v24 }
  0x4a   :  { %1230 = vmatprep.subr.bf16.mxu0 %v1420_v26  ;;  %1251 = vmatpush3.bf16.msra.mxu1 %v1419_v25 }
  0x4b   :  { %1252 = vmatprep.subr.bf16.mxu1 %v1421_v27 }
  0x4d   :  { %1231 = vmatpush3.bf16.msra.mxu0 %v1422_v28 }
  0x4e   :  { %1232 = vmatprep.subr.bf16.mxu0 %v1424_v30  ;;  %1253 = vmatpush3.bf16.msra.mxu1 %v1423_v29 }
  0x4f   :  { %1254 = vmatprep.subr.bf16.mxu1 %v1425_v31 }
  0x51   :  { %1233 = vmatpush3.bf16.msra.mxu0 %v1426_v32 }
  0x52   :  { %1255 = vmatpush3.bf16.msra.mxu1 %v1427_v34  ;;  %1316 = vmatprep.subr.bf16.mxu0 %v1315_v2 }
  0x54   :  { %856 = vmatmul.mubr.bf16.vlgmr.msra.gmra.mrb[4].mxu0 %v225_v61 }
  0x55   :  { %897 = vmatmul.mubr.bf16.vlgmr.msra.gmra.mrb[4].mxu1 %v227_v63  ;;  %1318 = vmatpush3.bf16.msra.mxu0 %v1315_v2 }
  0x56   :  { %1320 = vmatprep.subr.bf16.mxu0 %v1319_v4 }
  0x59   :  { %1322 = vmatpush3.bf16.msra.mxu0 %v1319_v4 }
  0x5a   :  { %1324 = vmatprep.subr.bf16.mxu0 %v1323_v7 }
  0x5d   :  { %1326 = vmatpush3.bf16.msra.mxu0 %v1323_v7 }
  0x5e   :  { %1328 = vmatprep.subr.bf16.mxu0 %v1327_v10 }
  0x61   :  { %1330 = vmatpush3.bf16.msra.mxu0 %v1327_v10 }
  0x62   :  { %1332 = vmatprep.subr.bf16.mxu0 %v1331_v13 }
  0x65   :  { %1334 = vmatpush3.bf16.msra.mxu0 %v1331_v13 }
  0x66   :  { %1336 = vmatprep.subr.bf16.mxu0 %v1335_v16 }
  0x69   :  { %1338 = vmatpush3.bf16.msra.mxu0 %v1335_v16 }
  0x6a   :  { %1340 = vmatprep.subr.bf16.mxu0 %v1339_v19 }
  0x6d   :  { %1342 = vmatpush3.bf16.msra.mxu0 %v1339_v19 }
  0x6e   :  { %1344 = vmatprep.subr.bf16.mxu0 %v1343_v22 }
  0x71   :  { %1346 = vmatpush3.bf16.msra.mxu0 %v1343_v22 }
 0x107   :  { %v1190_v23 = vpop.f32.mrb[0].mxu0 }
 0x108   :  { %v1191_v24 = vpop.f32.mrb[1].mxu0  ;;  %v1212_v25 = vpop.f32.mrb[0].mxu1 }
 0x109   :  { %v1192_v26 = vadd.f32 %v1191_v24, %v1190_v23  ;;  %v1193_v27 = vpop.f32.mrb[2].mxu0  ;;  %v1213_v28 = vpop.f32.mrb[1].mxu1 }
 0x10a   :  { %v1194_v29 = vpop.f32.mrb[3].mxu0  ;;  %v1214_v30 = vadd.f32 %v1213_v28, %v1212_v25  ;;  %v1215_v31 = vpop.f32.mrb[2].mxu1 }
 0x10b   :  { %v1195_v32 = vadd.f32 %v1194_v29, %v1193_v27  ;;  %v1216_v34 = vpop.f32.mrb[3].mxu1 }
 0x10c   :  { %v817_v35 = vadd.f32 %v1214_v30, %v1192_v26  ;;  %v1217_v36 = vadd.f32 %v1216_v34, %v1215_v31 }
 0x10e   :  { %v820_v38 = vadd.f32 %v1217_v36, %v1195_v32 }
 0x127   :  { %v1234_v39 = vpop.f32.mrb[4].mxu0 }
 0x128   :  { %v1256_v40 = vpop.f32.mrb[4].mxu1  ;;  %v1235_v41 = vpop.f32.mrb[5].mxu0 }
 0x129   :  { %v1236_v42 = vadd.f32 %v1235_v41, %v1234_v39  ;;  %v1257_v43 = vpop.f32.mrb[5].mxu1  ;;  %v1237_v44 = vpop.f32.mrb[6].mxu0 }
 0x12a   :  { %v1258_v45 = vadd.f32 %v1257_v43, %v1256_v40  ;;  %v1259_v46 = vpop.f32.mrb[6].mxu1  ;;  %v1238_v47 = vpop.f32.mrb[7].mxu0 }
 0x12b   :  { %v858_v48 = vadd.f32 %v1236_v42, %v817_v35  ;;  %v1239_v49 = vadd.f32 %v1238_v47, %v1237_v44  ;;  %v1260_v50 = vpop.f32.mrb[7].mxu1 }
 0x12c   :  { %v1261_v51 = vadd.f32 %v1260_v50, %v1259_v46 }
 0x12d   :  { %v899_v52 = vadd.f32 %v1258_v45, %v858_v48  ;;  %v861_v53 = vadd.f32 %v1239_v49, %v820_v38 }
 0x12f   :  { %v905_v54 = vmax.f32 %v899_v52, 0.0  ;;  %v902_v55 = vadd.f32 %v1261_v51, %v861_v53 }
 0x131   :  { %v906_v56 = vmax.f32 %v902_v55, 0.0  ;;  %1312 = vmatprep.mubr.f32.mxu0 %v905_v54 }
 0x133   :  { %1313 = vmatmul.mubr.f32.vlgmr.msra.gmra.mrb[8].mxu0 %v906_v56 }
 0x206   :  { %v1314_v61 = vpop.f32.mrb[8].mxu0 }
 0x207   :  { %v989_v62 = vpop.f32.mrb[9].mxu0 }
 0x208   :  { %v998_v63 = vpack.c.bf16 %v1314_v61, %v989_v62 }
 0x20a   :  { %v1007_v0 = vrot.slane %v998_v63, %v1006_v60 }
 0x20c   :  { %1170 = vst.sshfl [vmem:[#allocation4] sm:$0x1 pattern:$0x73625140] %v1007_v0 }
 0x213   :  { %v1082_v37 = vld [vmem:[#allocation4] sm:$0x1] }
 0x214   :  { %1083 = vst [vmem:[%s1625_s3] sm:$0x1] %v1082_v37 }
 0x215   :  { %1100 = vsyncpa [#allocation3], 1 }

</bundles_post_ra>
